<compile_context>
chip_gen: v5e
topology: v5e:2x2
jax: 0.10.0
libtpu: 0.0.40
codegen_flags: <defaults>
</compile_context>

<pallas_src>
import math

import jax
import jax.numpy as jnp
from jax.experimental import pallas as pl
from jax.experimental.pallas import tpu as pltpu

# Per-class positive weights from the reference module (defined for 6 or 19 classes).
_WEIGHTS_6 = (0.732229646, 0.691485987, 0.943847012, 0.904791626, 0.528020218,
              0.888389797)
_WEIGHTS_19 = (0.732229646, 0.960300001, 0.921019512, 0.883857039, 0.691485987,
               0.943847012, 0.849559514, 0.904791626, 0.528020218, 0.981336908,
               0.997922912, 0.933318326, 0.939263094, 0.992254407, 0.962939846,
               0.62530568, 0.99958049, 0.888389797, 0.757727687)

# exp(-|PAD_LOGIT|) underflows to 0 in f32 and the padded target is 0, so every
# padded element contributes exactly 0 to the weighted sum.
_PAD_LOGIT = -30000.0


def _round_up(x, n):
    return (x + n - 1) // n * n


def _cdiv(a, b):
    return -(-a // b)


def _bfocal_kernel(x_ref, t_ref, negw_ref, diffw_ref, part_ref, acc_ref):
    """One (tm, W) lane-dense tile of logits / targets.

    x_ref, t_ref : (tm, W)  raw logits / binary targets (native dtype)
    negw_ref     : (1, W)   1 - pos_weight, tiled along lanes (f32)
    diffw_ref    : (1, W)   pos_weight - neg_weight, tiled along lanes (f32)
    part_ref     : (1, 1)   per-parallel-slice partial sum (SMEM output)
    acc_ref      : (1, W)   running f32 accumulator (VMEM scratch)
    """
    i = pl.program_id(1)

    @pl.when(i == 0)
    def _init():
        acc_ref[...] = jnp.zeros_like(acc_ref)

    x = x_ref[...].astype(jnp.float32)
    t = t_ref[...].astype(jnp.float32)

    # Numerically stable BCE-with-logits:
    #   -(t*log(sigmoid(x)) + (1-t)*log(1-sigmoid(x)))
    #     = max(x, 0) - t*x + log(1 + exp(-|x|))
    # Matches the reference sigmoid + log(p + 1e-10) to well under the test
    # tolerance for non-saturated logits, and is exactly 0 for the padded tail.
    bce = jnp.maximum(x, 0.0) - t * x + jnp.log(1.0 + jnp.exp(-jnp.abs(x)))

    # wt = t*pos_w + (1-t)*neg_w, folded as neg_w + t*(pos_w - neg_w).
    wt = negw_ref[...] + t * diffw_ref[...]

    # Per-step partial: sublane reduce into a lane-wide accumulator; the single
    # cross-lane reduce is deferred to the epilogue.
    acc_ref[...] += jnp.sum(bce * wt, axis=0, keepdims=True)

    @pl.when(i == pl.num_programs(1) - 1)
    def _finalize():
        part_ref[0, 0] = jnp.sum(acc_ref[...])


def bfocal_loss(output, target, *, n_parallel=2):
    """Pallas implementation of BFocalLoss.forward: sum(weighted BCE) / m."""
    m, n_classes = target.shape
    assert output.shape == target.shape

    if n_classes == 6:
        w = _WEIGHTS_6
    else:
        # TODO(synk): the PyTorch reference only broadcasts for 6 or 19 classes;
        # other class counts are undefined in the original module.
        assert n_classes == 19, "BFocalLoss weights are only defined for 6 or 19 classes"
        w = _WEIGHTS_19

    # Lane-dense width: multiple of lcm(C, 128) so the class-weight pattern tiles
    # cleanly along lanes and row-to-row.  (384 for C=6, 2432 for C=19.)
    base = n_classes * 128 // math.gcd(n_classes, 128)
    lane_w = base * max(1, 512 // base)

    total = m * n_classes
    rows_needed = max(1, _cdiv(total, lane_w))

    # Don't manufacture parallel slices (and the padding that comes with them)
    # for inputs smaller than one row-tile per slice.
    n_par = max(1, min(n_parallel, rows_needed))

    # Row-tile size: ~8 MiB total of double-buffered input tiles keeps us well
    # inside the scoped-VMEM limit on every generation (v5e/v6e/v7x) while making
    # tiles large enough (>~1 MiB each) to sit near the HBM roofline.
    bytes_per_row = lane_w * (output.dtype.itemsize + target.dtype.itemsize)
    tm_budget = max(8, ((8 << 20) // (2 * bytes_per_row)) // 8 * 8)
    tm = int(min(tm_budget, 1024,
                 max(8, _round_up(_cdiv(rows_needed, n_par), 8))))
    n_tiles = _cdiv(rows_needed, n_par * tm)
    rows_padded = n_par * n_tiles * tm

    pad = rows_padded * lane_w - total
    if pad == 0:
        # Contiguous row-major reshape: free (bitcast), no extra HBM traffic.
        x2 = output.reshape(rows_padded, lane_w)
        t2 = target.reshape(rows_padded, lane_w)
    else:
        x2 = jnp.pad(output.reshape(-1), (0, pad),
                     constant_values=_PAD_LOGIT).reshape(rows_padded, lane_w)
        t2 = jnp.pad(target.reshape(-1), (0, pad),
                     constant_values=0).reshape(rows_padded, lane_w)

    # Pre-tiled per-position weight constants (compile-time, lane-dense).
    pos_w = jnp.tile(jnp.asarray(w, dtype=jnp.float32),
                     lane_w // n_classes).reshape(1, lane_w)
    neg_w = 1.0 - pos_w
    diff_w = pos_w - neg_w

    partials = pl.pallas_call(
        _bfocal_kernel,
        out_shape=jax.ShapeDtypeStruct((n_par, 1), jnp.float32),
        grid_spec=pltpu.PrefetchScalarGridSpec(
            num_scalar_prefetch=0,
            grid=(n_par, n_tiles),
            in_specs=[
                pl.BlockSpec((tm, lane_w), lambda p, i: (p * n_tiles + i, 0)),
                pl.BlockSpec((tm, lane_w), lambda p, i: (p * n_tiles + i, 0)),
                pl.BlockSpec((1, lane_w), lambda p, i: (0, 0)),
                pl.BlockSpec((1, lane_w), lambda p, i: (0, 0)),
            ],
            out_specs=pl.BlockSpec((1, 1), lambda p, i: (p, 0),
                                   memory_space=pltpu.SMEM),
            scratch_shapes=[pltpu.VMEM((1, lane_w), jnp.float32)],
        ),
        compiler_params=pltpu.CompilerParams(
            dimension_semantics=("parallel", "arbitrary"),
            vmem_limit_bytes=32 * 1024 * 1024,
        ),
    )(x2, t2, neg_w, diff_w)

    return jnp.sum(partials) / jnp.float32(m)


def _reference_loss(output, target):
    # Pure-JAX mirror of the PyTorch reference (sigmoid + log(p + eps)).
    m, c = target.shape
    w = jnp.asarray(_WEIGHTS_6 if c == 6 else _WEIGHTS_19, jnp.float32)[None, :]
    p = jax.nn.sigmoid(output.astype(jnp.float32))
    t = target.astype(jnp.float32)
    eps = 1e-10
    wt = t * w + (1.0 - t) * (1.0 - w)
    ul = -(t * jnp.log(p + eps) + (1.0 - t) * jnp.log(1.0 - p + eps))
    return jnp.sum(ul * wt) / m


if __name__ == "__main__":
    key = jax.random.PRNGKey(0)
    for (m, c) in ((8, 6), (16, 19)):
        key, k1, k2 = jax.random.split(key, 3)
        logits = jax.random.normal(k1, (m, c), dtype=jnp.float32)
        labels = (jax.random.uniform(k2, (m, c)) > 0.5).astype(jnp.float32)

        loss = bfocal_loss(logits, labels)
        jax.block_until_ready(loss)

        ref = _reference_loss(logits, labels)
        assert jnp.allclose(loss, ref, rtol=1e-5, atol=1e-5), (m, c, loss, ref)

    print("KERNEL_OK")
</pallas_src>

<mosaic_0001>
module attributes {stable_mosaic.version = 11 : i64} {
  func.func @_bfocal_kernel(%arg0: i32, %arg1: i32, %arg2: memref<8x384xf32, #tpu.memory_space<vmem>>, %arg3: memref<8x384xf32, #tpu.memory_space<vmem>>, %arg4: memref<1x384xf32, #tpu.memory_space<vmem>>, %arg5: memref<1x384xf32, #tpu.memory_space<vmem>>, %arg6: memref<1x1xf32, #tpu.memory_space<smem>>, %arg7: memref<1x384xf32, #tpu.memory_space<vmem>>) attributes {dimension_semantics = [#tpu.dimension_semantics<parallel>, #tpu.dimension_semantics<arbitrary>], iteration_bounds = array<i64: 1, 1>, scalar_prefetch = 0 : i64, scratch_operands = 1 : i64, tpu.core_type = #tpu.core_type<tc>, window_params = [{transform_indices = @transform_0, window_bounds = array<i64: 8, 384>}, {transform_indices = @transform_1, window_bounds = array<i64: 8, 384>}, {pipeline_mode = #tpu.pipeline_mode<synchronous>, transform_indices = @transform_2, window_bounds = array<i64: 1, 384>}, {pipeline_mode = #tpu.pipeline_mode<synchronous>, transform_indices = @transform_3, window_bounds = array<i64: 1, 384>}, {transform_indices = @transform_4, window_bounds = array<i64: 1, 1>}]} {
    %c0_i32 = arith.constant 0 : i32
    %0 = arith.cmpi eq, %arg1, %c0_i32 : i32
    %1 = arith.extui %0 : i1 to i32
    %c0_i32_0 = arith.constant 0 : i32
    %2 = arith.cmpi ne, %1, %c0_i32_0 : i32
    scf.if %2 {
      %cst_17 = arith.constant 0.000000e+00 : f32
      %32 = vector.broadcast %cst_17 : f32 to vector<1x384xf32>
      %c0_18 = arith.constant 0 : index
      %c0_19 = arith.constant 0 : index
      %33 = vector.load %arg7[%c0_18, %c0_19] : memref<1x384xf32, #tpu.memory_space<vmem>>, vector<1x384xf32>
      tpu.vector_store %arg7[%c0_18, %c0_19], %32 {strides = array<i32>} : memref<1x384xf32, #tpu.memory_space<vmem>>, vector<1x384xf32>,
    } else {
    }
    %c0 = arith.constant 0 : index
    %c0_1 = arith.constant 0 : index
    %3 = vector.load %arg2[%c0, %c0_1] : memref<8x384xf32, #tpu.memory_space<vmem>>, vector<8x384xf32>
    %c0_2 = arith.constant 0 : index
    %c0_3 = arith.constant 0 : index
    %4 = vector.load %arg3[%c0_2, %c0_3] : memref<8x384xf32, #tpu.memory_space<vmem>>, vector<8x384xf32>
    %cst = arith.constant 0.000000e+00 : f32
    %5 = vector.broadcast %cst : f32 to vector<8x384xf32>
    %6 = arith.maximumf %3, %5 : vector<8x384xf32>
    %7 = arith.mulf %4, %3 : vector<8x384xf32>
    %8 = arith.subf %6, %7 : vector<8x384xf32>
    %9 = math.absf %3 : vector<8x384xf32>
    %cst_4 = arith.constant 0.000000e+00 : f32
    %10 = vector.broadcast %cst_4 : f32 to vector<8x384xf32>
    %11 = arith.subf %10, %9 : vector<8x384xf32>
    %12 = math.exp %11 : vector<8x384xf32>
    %cst_5 = arith.constant 1.000000e+00 : f32
    %13 = vector.broadcast %cst_5 : f32 to vector<8x384xf32>
    %14 = arith.addf %13, %12 : vector<8x384xf32>
    %15 = math.log %14 : vector<8x384xf32>
    %16 = arith.addf %8, %15 : vector<8x384xf32>
    %c0_6 = arith.constant 0 : index
    %c0_7 = arith.constant 0 : index
    %17 = vector.load %arg4[%c0_6, %c0_7] : memref<1x384xf32, #tpu.memory_space<vmem>>, vector<1x384xf32>
    %c0_8 = arith.constant 0 : index
    %c0_9 = arith.constant 0 : index
    %18 = vector.load %arg5[%c0_8, %c0_9] : memref<1x384xf32, #tpu.memory_space<vmem>>, vector<1x384xf32>
    %19 = vector.broadcast %18 : vector<1x384xf32> to vector<8x384xf32>
    %20 = arith.mulf %4, %19 : vector<8x384xf32>
    %21 = vector.broadcast %17 : vector<1x384xf32> to vector<8x384xf32>
    %22 = arith.addf %21, %20 : vector<8x384xf32>
    %c0_10 = arith.constant 0 : index
    %c0_11 = arith.constant 0 : index
    %23 = vector.load %arg7[%c0_10, %c0_11] : memref<1x384xf32, #tpu.memory_space<vmem>>, vector<1x384xf32>
    %24 = arith.mulf %16, %22 : vector<8x384xf32>
    %cst_12 = arith.constant dense<0.000000e+00> : vector<384xf32>
    %25 = vector.multi_reduction <add>, %24, %cst_12 [0] : vector<8x384xf32> to vector<384xf32>
    %26 = vector.shape_cast %25 : vector<384xf32> to vector<1x384xf32>
    %27 = arith.addf %23, %26 : vector<1x384xf32>
    %c0_13 = arith.constant 0 : index
    %c0_14 = arith.constant 0 : index
    %28 = vector.load %arg7[%c0_13, %c0_14] : memref<1x384xf32, #tpu.memory_space<vmem>>, vector<1x384xf32>
    tpu.vector_store %arg7[%c0_13, %c0_14], %27 {strides = array<i32>} : memref<1x384xf32, #tpu.memory_space<vmem>>, vector<1x384xf32>,
    %c0_i32_15 = arith.constant 0 : i32
    %29 = arith.cmpi eq, %arg1, %c0_i32_15 : i32
    %30 = arith.extui %29 : i1 to i32
    %c0_i32_16 = arith.constant 0 : i32
    %31 = arith.cmpi ne, %30, %c0_i32_16 : i32
    scf.if %31 {
      %c0_17 = arith.constant 0 : index
      %c0_18 = arith.constant 0 : index
      %32 = vector.load %arg7[%c0_17, %c0_18] : memref<1x384xf32, #tpu.memory_space<vmem>>, vector<1x384xf32>
      %33 = vector.shape_cast %32 : vector<1x384xf32> to vector<1x1x384xf32>
      %cst_19 = arith.constant dense<0.000000e+00> : vector<1xf32>
      %34 = vector.multi_reduction <add>, %33, %cst_19 [1, 2] : vector<1x1x384xf32> to vector<1xf32>
      %35 = vector.shape_cast %34 : vector<1xf32> to vector<1x1x1xf32>
      %36 = vector.extract %35[0, 0, 0] : f32 from vector<1x1x1xf32>
      %c0_20 = arith.constant 0 : index
      %c0_21 = arith.constant 0 : index
      %37 = memref.load %arg6[%c0_20, %c0_21] : memref<1x1xf32, #tpu.memory_space<smem>>
      memref.store %36, %arg6[%c0_20, %c0_21] : memref<1x1xf32, #tpu.memory_space<smem>>
    } else {
    }
    return
  }
  func.func @transform_0(%arg0: i32, %arg1: i32) -> (i32, i32) {
    %c1_i32 = arith.constant 1 : i32
    %0 = arith.muli %arg0, %c1_i32 : i32
    %1 = arith.addi %0, %arg1 : i32
    %c0_i32 = arith.constant 0 : i32
    %c0_i32_0 = arith.constant 0 : i32
    return %1, %c0_i32 : i32, i32
  }
  func.func @transform_1(%arg0: i32, %arg1: i32) -> (i32, i32) {
    %c1_i32 = arith.constant 1 : i32
    %0 = arith.muli %arg0, %c1_i32 : i32
    %1 = arith.addi %0, %arg1 : i32
    %c0_i32 = arith.constant 0 : i32
    %c0_i32_0 = arith.constant 0 : i32
    return %1, %c0_i32 : i32, i32
  }
  func.func @transform_2(%arg0: i32, %arg1: i32) -> (i32, i32) {
    %c0_i32 = arith.constant 0 : i32
    %c0_i32_0 = arith.constant 0 : i32
    %c0_i32_1 = arith.constant 0 : i32
    return %c0_i32, %c0_i32_0 : i32, i32
  }
  func.func @transform_3(%arg0: i32, %arg1: i32) -> (i32, i32) {
    %c0_i32 = arith.constant 0 : i32
    %c0_i32_0 = arith.constant 0 : i32
    %c0_i32_1 = arith.constant 0 : i32
    return %c0_i32, %c0_i32_0 : i32, i32
  }
  func.func @transform_4(%arg0: i32, %arg1: i32) -> (i32, i32) {
    %c0_i32 = arith.constant 0 : i32
    %c0_i32_0 = arith.constant 0 : i32
    return %arg0, %c0_i32 : i32, i32
  }
}

</mosaic_0001>

<bundles_post_ra>
// kernel: tpu_custom_call.1
= control target key start
LH: loop header
LB: loop body
LE: loop exit
PB: predicated region body
PF: predicated region fallthrough
CT: control target
= control target key end

     0   :  { %9 = vsyncpa [#allocation4], 0  ;;  %s426_s0 = inlined_call_operand.hbm [shape: f32[8,384], index: 0, kind: input, shape index: {}]   ;;  %s427_s1 = inlined_call_operand.hbm [shape: f32[8,384], index: 1, kind: input, shape index: {}]   ;;  %s428_s2 = inlined_call_operand.hbm [shape: f32[1,384], index: 2, kind: input, shape index: {}]   ;;  %s429_s3 = inlined_call_operand.hbm [shape: f32[1,384], index: 3, kind: input, shape index: {}]   ;;  %s430_s4 = inlined_call_operand.hbm [shape: f32[1,1], index: 4, kind: output, shape index: {}]  }
   0x1   :  { %10 = vsyncpa [#allocation7], 0 }
   0x2   :  { %11 = vsyncpa [#allocation10], 0  ;;  %s37_s17 = sshll.u32 %s427_s1, 4  ;;  %s38_s17 = int_to_ptr.hbm [resolvable:$true] %s37_s17 }
   0x3   :  { %12 = vsyncpa [#allocation5], 0  ;;  %s372_s18 = smov [#allocation6]   ;;  %s22_s22 = sshll.u32 %s426_s0, 4  ;;  %s23_s22 = int_to_ptr.hbm [resolvable:$true] %s22_s22 }
   0x4   :  { %s39_s19 = sshll.u32 %s372_s18, 4  ;;  %s373_s23 = smov [#allocation3]   ;;  %s40_s19 = int_to_ptr.vmem [resolvable:$true] %s39_s19 }
   0x5   :  { %42 = dma.hbm_to_vmem [thread:$0]  %s38_s17, 384, %s40_s19, [#allocation7]  }
   0x6   :  { %s24_s24 = sshll.u32 %s373_s23, 4  ;;  %s48_s27 = sshll.u32 %s428_s2, 4  ;;  %s25_s24 = int_to_ptr.vmem [resolvable:$true] %s24_s24  ;;  %s49_s27 = int_to_ptr.hbm [resolvable:$true] %s48_s27 }
   0x7   :  { %27 = dma.hbm_to_vmem [thread:$0]  %s23_s22, 384, %s25_s24, [#allocation4]  }
   0x8   :  { %s59_s29 = sshll.u32 %s429_s3, 4  ;;  %s374_s30 = smov [#allocation8]   ;;  %s60_s29 = int_to_ptr.hbm [resolvable:$true] %s59_s29 }
   0x9   :  { %s50_s5 = sshll.u32 %s374_s30, 4  ;;  %s375_s0 = smov [#allocation9]   ;;  %s51_s5 = int_to_ptr.vmem [resolvable:$true] %s50_s5 }
   0xa   :  { %53 = dma.hbm_to_vmem [thread:$0]  %s49_s27, 48, %s51_s5, [#allocation7]  }
   0xb   :  { %s61_s6 = sshll.u32 %s375_s0, 4  ;;  %s62_s6 = int_to_ptr.vmem [resolvable:$true] %s61_s6 }
   0xc   :  { %64 = dma.hbm_to_vmem [thread:$0]  %s60_s29, 48, %s62_s6, [#allocation10]  }
   0xd   :  { %364 = dma.done.wait [#allocation4], 384  }
   0xe   :  { %365 = vsyncadd [#allocation4], 4294966912 }
   0xf   :  { %366 = dma.done.wait [#allocation7], 432  }
  0x10   :  { %367 = vsyncadd [#allocation7], 4294966864 }
  0x11   :  { %368 = dma.done.wait [#allocation10], 48  }
  0x12   :  { %369 = vsyncadd [#allocation10], 4294967248  ;;  %v87_v0 = vlaneseq  ;;  %v376_v2 = vmov 0.0   ;;  %v92_v3 = vld [vmem:[#allocation3] sm:$0xff]  ;;  %v93_v4 = vld [vmem:[#allocation3 + $0x8] sm:$0xff]  ;;  %vm180_vm1 = vcmask 1040384  }
  0x13   :  { %v94_v5 = vld [vmem:[#allocation3 + $0x10] sm:$0xff]  ;;  %v107_v6 = vand.u32 2147483647, %v92_v3  ;;  %v108_v7 = vand.u32 2147483647, %v93_v4  ;;  %v95_v18 = vld [vmem:[#allocation6] sm:$0xff] }
  0x14   :  { %vm415_vm0 = vcmp.lt.s32.totalorder %v87_v0, 384  ;;  %v109_v8 = vand.u32 2147483647, %v94_v5  ;;  %v132_v16 = vld [vmem:[#allocation9] sm:$0x7]  ;;  %v96_v21 = vld [vmem:[#allocation6 + $0x8] sm:$0xff]  ;;  %v101_v28 = vmul.f32 %v95_v18, %v92_v3 }
  0x15   :  { %91 = vst.msk [vmem:[#allocation2] sm:$0x7] %vm415_vm0, %v376_v2  ;;  %v110_v9 = vsub.f32 0.0, %v107_v6  ;;  %v111_v10 = vsub.f32 0.0, %v108_v7  ;;  %v134_v23 = vperm.slane %v132_v16, 0  ;;  %v97_v24 = vld [vmem:[#allocation6 + $0x10] sm:$0xff]  ;;  %v102_v32 = vmul.f32 %v96_v21, %v93_v4 }
  0x16   :  { %v112_v11 = vsub.f32 0.0, %v109_v8  ;;  %v135_v26 = vperm.slane %v132_v16, 1  ;;  %v98_v27 = vmax.f32 %v92_v3, 0.0  ;;  %v131_v29 = vld [vmem:[#allocation8] sm:$0x7]  ;;  %v136_v30 = vperm.slane %v132_v16, 2 }
  0x17   :  { %v113_v12 = vmul.f32 1.442695, %v110_v9  ;;  %v115_v13 = vmul.f32 1.442695, %v111_v10  ;;  %v99_v31 = vmax.f32 %v93_v4, 0.0  ;;  %v100_v33 = vmax.f32 %v94_v5, 0.0 }
  0x18   :  { %v117_v14 = vmul.f32 1.442695, %v112_v11  ;;  %v103_v34 = vmul.f32 %v97_v24, %v94_v5  ;;  %v140_v35 = vmul.f32 %v134_v23, %v95_v18  ;;  %v144_v36 = vperm.slane %v131_v29, 0  ;;  %s223_s7 = sshll.u32 %s430_s4, 4  ;;  %s377_s9 = smov [#allocation11]   ;;  %s224_s7 = int_to_ptr.hbm [resolvable:$true] %s223_s7 }
  0x19   :  { %244 = vpow2.f32 %v113_v12  ;;  %v141_v37 = vmul.f32 %v135_v26, %v96_v21  ;;  %v145_v38 = vperm.slane %v131_v29, 1  ;;  %v104_v39 = vsub.f32 %v98_v27, %v101_v28 }
  0x1a   :  { %246 = vpow2.f32 %v115_v13  ;;  %v142_v40 = vmul.f32 %v136_v30, %v97_v24  ;;  %v146_v41 = vperm.slane %v131_v29, 2  ;;  %v105_v43 = vsub.f32 %v99_v31, %v102_v32 }
  0x1b   :  { %248 = vpow2.f32 %v117_v14  ;;  %v106_v45 = vsub.f32 %v100_v33, %v103_v34  ;;  %v150_v47 = vadd.f32 %v144_v36, %v140_v35  ;;  %v151_v50 = vadd.f32 %v145_v38, %v141_v37 }
  0x1c   :  { %v152_v53 = vadd.f32 %v146_v41, %v142_v40  ;;  %vm182_vm2 = vcmask 1041408  }
  0x1f   :  { %v245_v15 = vpop.eup %244 }
  0x20   :  { %v247_v17 = vpop.eup %246  ;;  %v119_v19 = vadd.f32 1.0, %v245_v15  ;;  %v153_v15 = vld [vmem:[#allocation2] sm:$0x7] }
  0x21   :  { %v249_v20 = vpop.eup %248  ;;  %v120_v22 = vadd.f32 1.0, %v247_v17 }
  0x22   :  { %v121_v25 = vadd.f32 1.0, %v249_v20  ;;  %250 = vlog2.f32 %v119_v19 }
  0x23   :  { %252 = vlog2.f32 %v120_v22 }
  0x24   :  { %254 = vlog2.f32 %v121_v25 }
  0x28   :  { %v251_v42 = vpop.eup %250 }
  0x29   :  { %v253_v44 = vpop.eup %252  ;;  %v123_v46 = vmul.f32 0.6931472, %v251_v42 }
  0x2a   :  { %v255_v48 = vpop.eup %254  ;;  %v125_v49 = vmul.f32 0.6931472, %v253_v44 }
  0x2b   :  { %v127_v51 = vmul.f32 0.6931472, %v255_v48  ;;  %v128_v52 = vadd.f32 %v123_v46, %v104_v39 }
  0x2c   :  { %v129_v54 = vadd.f32 %v125_v49, %v105_v43 }
  0x2d   :  { %v130_v55 = vadd.f32 %v127_v51, %v106_v45  ;;  %v154_v56 = vmul.f32 %v150_v47, %v128_v52 }
  0x2e   :  { %v155_v57 = vmul.f32 %v151_v50, %v129_v54 }
  0x2f   :  { %v156_v58 = vmul.f32 %v152_v53, %v130_v55  ;;  %v157_v59 = vrot.slane %v154_v56, 4 }
  0x30   :  { %v163_v60 = vrot.slane %v155_v57, 4 }
  0x31   :  { %v158_v61 = vadd.f32 %v157_v59, %v154_v56  ;;  %v169_v62 = vrot.slane %v156_v58, 4 }
  0x32   :  { %v164_v63 = vadd.f32 %v163_v60, %v155_v57 }
  0x33   :  { %v159_v0 = vrot.slane %v158_v61, 2  ;;  %v170_v2 = vadd.f32 %v169_v62, %v156_v58 }
  0x34   :  { %v165_v3 = vrot.slane %v164_v63, 2 }
  0x35   :  { %v160_v4 = vadd.f32 %v159_v0, %v158_v61  ;;  %v171_v5 = vrot.slane %v170_v2, 2 }
  0x36   :  { %v166_v6 = vadd.f32 %v165_v3, %v164_v63 }
  0x37   :  { %v161_v7 = vrot.slane %v160_v4, 1  ;;  %v172_v8 = vadd.f32 %v171_v5, %v170_v2 }
  0x38   :  { %v167_v9 = vrot.slane %v166_v6, 1 }
  0x39   :  { %v173_v10 = vrot.slane %v172_v8, 1  ;;  %v162_v11 = vadd.f32 %v161_v7, %v160_v4 }
  0x3a   :  { %v168_v12 = vadd.f32 %v167_v9, %v166_v6 }
  0x3b   :  { %v174_v13 = vadd.f32 %v173_v10, %v172_v8 }
  0x3c   :  { %v178_v14 = vrot.slane %v168_v12, 7 }
  0x3d   :  { %v179_v16 = vrot.slane %v174_v13, 6 }
  0x3e   :  { %v181_v17 = vsel %vm180_vm1, %v162_v11, %v178_v14 }
  0x3f   :  { %v183_v18 = vsel %vm182_vm2, %v181_v17, %v179_v16 }
  0x40   :  { %v185_v19 = vadd.f32 %v183_v18, %v153_v15 }
  0x42   :  { %190 = vst.msk [vmem:[#allocation2] sm:$0x7] %vm415_vm0, %v185_v19 }
  0x49   :  { %v194_v20 = vld [vmem:[#allocation2] sm:$0x7] }
  0x4a   :  { %v196_v21 = vperm.slane %v194_v20, 0  ;;  %v197_v22 = vperm.slane %v194_v20, 1  ;;  %v198_v23 = vperm.slane %v194_v20, 2 }
  0x4c   :  { %v202_v24 = vsel %vm180_vm1, %v196_v21, 0.0  ;;  %v203_v25 = vsel %vm180_vm1, %v197_v22, 0.0  ;;  %v205_v26 = vsel %vm180_vm1, %v198_v23, 0.0 }
  0x4d   :  { %v204_v27 = vadd.f32 %v203_v25, %v202_v24 }
  0x4f   :  { %v206_v28 = vadd.f32 %v205_v26, %v204_v27 }
  0x51   :  { %207 = vadd.xlane.f32.xlu0 %v206_v28 }
  0xc4   :  { %v208_v29 = vpop.xlane.xlu0 %207 }
  0xc5   :  { %v209_v30 = vrot.slane %v208_v29, 4 }
  0xc7   :  { %v210_v31 = vadd.f32 %v209_v30, %v208_v29 }
  0xc9   :  { %v211_v32 = vrot.slane %v210_v31, 2 }
  0xcb   :  { %v212_v33 = vadd.f32 %v211_v32, %v210_v31 }
  0xcd   :  { %v213_v34 = vrot.slane %v212_v33, 1 }
  0xcf   :  { %v214_v35 = vadd.f32 %v213_v34, %v212_v33 }
  0xd1   :  { %236 = vpush %v214_v35 }
 0x102   :  { %s237_s8 = spop %236 }
 0x103   :  { %217 = sst [smem:[#allocation11]] %s237_s8 }
 0x104   :  { %226 = dma.smem_to_hbm %s377_s9, 16, %s224_s7, [#allocation5]  }
 0x105   :  { %370 = dma.done.wait [#allocation5], 16  }
 0x106   :  { %371 = vsyncadd [#allocation5], 4294967280 }
 0x107   :  { %231 = sfence }
 0x108   :  { %232 = vsyncpa [#allocation4], 1 }
 0x109   :  { %233 = vsyncpa [#allocation7], 1 }
 0x10a   :  { %234 = vsyncpa [#allocation10], 1 }
 0x10b   :  { %235 = vsyncpa [#allocation5], 1 }

</bundles_post_ra>
